<compile_context>
chip_gen: v7x
topology: tpu7x:2x2x1
jax: 0.10.0
libtpu: 0.0.40
codegen_flags: <defaults>
</compile_context>

<pallas_src>
import jax
import jax.numpy as jnp
from jax.experimental import pallas as pl
from jax.experimental.pallas import tpu as pltpu

_LANES = 128  # vreg lane width


def _sublane_multiple(dtype):
    # f32 -> 8, bf16 -> 16, int8/fp8 -> 32 (packed dtypes need taller tiles).
    itemsize = jnp.dtype(dtype).itemsize
    return max(8, 32 // itemsize)


def _linear_kernel(w_ref, b_ref, x_ref, o_ref):
    # w_ref, b_ref: (1, 1) scalars in SMEM.
    # x_ref, o_ref: (tile, 128) VMEM tiles.
    # out = x * w + b  -- pure VPU fused multiply-add; the kernel is HBM-bound,
    # so no compute-side tuning is needed here.
    o_ref[...] = x_ref[...] * w_ref[0, 0] + b_ref[0, 0]


def linear_forward(x, weight, bias, *, tile_rows=4096, min_grid_steps=8):
    """nn.Linear(1, 1) forward: x (N, 1), weight (1, 1), bias (1,) -> (N, 1)."""
    n, in_dim = x.shape
    out_dim, w_in = weight.shape
    assert in_dim == 1 and out_dim == 1 and w_in == 1, "kernel specialized to 1x1 Linear"

    w = weight.reshape(())
    b = bias.reshape(())

    sub = _sublane_multiple(x.dtype)
    chunk = _LANES * sub                  # smallest lane-dense, sublane-aligned slab (f32: 1024)
    n_main = (n // chunk) * chunk         # aligned prefix handled by the Pallas kernel

    # Small-N fast path: a fused XLA elementwise is already at roofline and
    # avoids all fixed launch / grid-step overhead (the demo's N=4 lands here).
    if n_main == 0:
        return x * w + b

    rows = n_main // _LANES               # multiple of `sub`

    # Tile sizing: big blocks amortize the ~0.35 us per-step overhead, but keep
    # >= min_grid_steps steps so double-buffering and the v7x 2-TC split stay fed.
    tile = min(tile_rows, rows)
    while tile > 256 and rows // tile < min_grid_steps:
        tile //= 2
    tile = max(sub, (tile // sub) * sub)  # keep (sub, 128) tiling constraint

    grid = pl.cdiv(rows, tile)            # ragged last block is masked by Pallas

    itemsize = jnp.dtype(x.dtype).itemsize
    # Zero-copy repack: contiguous (n_main, 1) -> (rows, 128). No pad buffer.
    slab = x[:n_main].reshape(rows, _LANES)

    out_slab = pl.pallas_call(
        _linear_kernel,
        out_shape=jax.ShapeDtypeStruct((rows, _LANES), x.dtype),
        grid=(grid,),
        in_specs=[
            pl.BlockSpec((1, 1), lambda i: (0, 0),
                         memory_space=pltpu.MemorySpace.SMEM),
            pl.BlockSpec((1, 1), lambda i: (0, 0),
                         memory_space=pltpu.MemorySpace.SMEM),
            pl.BlockSpec((tile, _LANES), lambda i: (i, 0)),
        ],
        out_specs=pl.BlockSpec((tile, _LANES), lambda i: (i, 0)),
        compiler_params=pltpu.CompilerParams(
            dimension_semantics=("parallel",),
        ),
        cost_estimate=pl.CostEstimate(
            flops=2 * n_main,
            transcendentals=0,
            bytes_accessed=2 * n_main * itemsize,
        ),
    )(weight.reshape(1, 1), bias.reshape(1, 1), slab)

    main_out = out_slab.reshape(n_main, 1)  # zero-copy reshape back
    if n_main == n:
        return main_out

    # Ragged tail (< chunk elements): plain-JAX fma, stitched on the end.
    tail_out = x[n_main:] * w + b
    return jnp.concatenate([main_out, tail_out], axis=0)


if __name__ == "__main__":
    input_dim = 1
    output_dim = 1

    # Deterministic parameter init (mimics nn.Linear's uniform(-1/sqrt(in), 1/sqrt(in)))
    key = jax.random.PRNGKey(0)
    kw, kb = jax.random.split(key)
    bound = 1.0 / (input_dim ** 0.5)
    weight = jax.random.uniform(
        kw, (output_dim, input_dim), jnp.float32, minval=-bound, maxval=bound
    )
    bias = jax.random.uniform(
        kb, (output_dim,), jnp.float32, minval=-bound, maxval=bound
    )

    def ref_fn(xs):
        return xs @ weight.T + bias

    # 1) The module's demo input (N=4): exercises the small-N fast path.
    x_small = jnp.array([[1.0], [2.0], [3.0], [3.5]], dtype=jnp.float32)
    # 2) Aligned input: exercises the Pallas kernel with zero-copy repack (no tail).
    x_aligned = jax.random.normal(jax.random.PRNGKey(1), (2048, 1), jnp.float32)
    # 3) Ragged input: kernel on the aligned prefix + plain-JAX tail + stitch.
    x_ragged = jax.random.normal(jax.random.PRNGKey(2), (3000, 1), jnp.float32)

    for xs in (x_small, x_aligned, x_ragged):
        out = jax.block_until_ready(linear_forward(xs, weight, bias))
        ref = ref_fn(xs)
        assert out.shape == xs.shape, (out.shape, xs.shape)
        assert jnp.allclose(out, ref, atol=1e-5, rtol=1e-5), float(
            jnp.max(jnp.abs(out - ref))
        )

    print("KERNEL_OK")
</pallas_src>

<mosaic_0001>
module attributes {stable_mosaic.version = 11 : i64} {
  func.func @_linear_kernel(%arg0: i32, %arg1: memref<1x1xf32, #tpu.memory_space<smem>>, %arg2: memref<1x1xf32, #tpu.memory_space<smem>>, %arg3: memref<16x128xf32, #tpu.memory_space<vmem>>, %arg4: memref<16x128xf32, #tpu.memory_space<vmem>>) attributes {dimension_semantics = [#tpu.dimension_semantics<parallel>], iteration_bounds = array<i64: 1>, scalar_prefetch = 0 : i64, scratch_operands = 0 : i64, tpu.core_type = #tpu.core_type<tc>, window_params = [{transform_indices = @transform_0, window_bounds = array<i64: 1, 1>}, {transform_indices = @transform_1, window_bounds = array<i64: 1, 1>}, {transform_indices = @transform_2, window_bounds = array<i64: 16, 128>}, {transform_indices = @transform_3, window_bounds = array<i64: 16, 128>}]} {
    %c0 = arith.constant 0 : index
    %c0_0 = arith.constant 0 : index
    %0 = vector.load %arg3[%c0, %c0_0] : memref<16x128xf32, #tpu.memory_space<vmem>>, vector<16x128xf32>
    %c0_1 = arith.constant 0 : index
    %c0_2 = arith.constant 0 : index
    %1 = memref.load %arg1[%c0_1, %c0_2] : memref<1x1xf32, #tpu.memory_space<smem>>
    %2 = vector.broadcast %1 : f32 to vector<16x128xf32>
    %3 = arith.mulf %0, %2 : vector<16x128xf32>
    %c0_3 = arith.constant 0 : index
    %c0_4 = arith.constant 0 : index
    %4 = memref.load %arg2[%c0_3, %c0_4] : memref<1x1xf32, #tpu.memory_space<smem>>
    %5 = vector.broadcast %4 : f32 to vector<16x128xf32>
    %6 = arith.addf %3, %5 : vector<16x128xf32>
    %c0_5 = arith.constant 0 : index
    %c0_6 = arith.constant 0 : index
    %7 = vector.load %arg4[%c0_5, %c0_6] : memref<16x128xf32, #tpu.memory_space<vmem>>, vector<16x128xf32>
    tpu.vector_store %arg4[%c0_5, %c0_6], %6 {strides = array<i32>} : memref<16x128xf32, #tpu.memory_space<vmem>>, vector<16x128xf32>,
    return
  }
  func.func @transform_0(%arg0: i32) -> (i32, i32) {
    %c0_i32 = arith.constant 0 : i32
    %c0_i32_0 = arith.constant 0 : i32
    %c0_i32_1 = arith.constant 0 : i32
    return %c0_i32, %c0_i32_0 : i32, i32
  }
  func.func @transform_1(%arg0: i32) -> (i32, i32) {
    %c0_i32 = arith.constant 0 : i32
    %c0_i32_0 = arith.constant 0 : i32
    %c0_i32_1 = arith.constant 0 : i32
    return %c0_i32, %c0_i32_0 : i32, i32
  }
  func.func @transform_2(%arg0: i32) -> (i32, i32) {
    %c0_i32 = arith.constant 0 : i32
    %c0_i32_0 = arith.constant 0 : i32
    return %arg0, %c0_i32 : i32, i32
  }
  func.func @transform_3(%arg0: i32) -> (i32, i32) {
    %c0_i32 = arith.constant 0 : i32
    %c0_i32_0 = arith.constant 0 : i32
    return %arg0, %c0_i32 : i32, i32
  }
}

</mosaic_0001>

<bundles_post_ra>
// kernel: tpu_custom_call.1
= control target key start
LH: loop header
LB: loop body
LE: loop exit
PB: predicated region body
PF: predicated region fallthrough
CT: control target
= control target key end

     0   :  { %10 = vsyncpa [#allocation5], 0  ;;  %s172_s0 = inlined_call_operand.<no memory space> [shape: f32[1,1], index: 0, kind: input, shape index: {}]   ;;  %s173_s1 = inlined_call_operand.<no memory space> [shape: f32[1,1], index: 1, kind: input, shape index: {}]   ;;  %s174_s2 = inlined_call_operand.hbm [shape: f32[16,128], index: 2, kind: input, shape index: {}]   ;;  %s175_s3 = inlined_call_operand.hbm [shape: f32[16,128], index: 3, kind: output, shape index: {}]  }
   0x1   :  { %11 = vsyncpa [#allocation6], 0  ;;  %s112_s12 = smov [#allocation4]   ;;  %s64_s16 = scalar_lea.hbm %s174_s2, 256 }
   0x2   :  { %s21_s13 = sshll.u32 %s112_s12, 4  ;;  %p65_p0 = scmp.ne.s32.totalorder %s174_s2, %s64_s16  ;;  %s22_s13 = int_to_ptr.vmem [resolvable:$true] %s21_s13 }
   0x3   :  { %p68_p1 = scmp.lt.u32.totalorder %s64_s16, %s174_s2 }
   0x5   :  { %p70_p2 = pnand %p68_p1, %p65_p0 }
   0x7   :  { %73 = shalt.err (!%p70_p2)
}
   0x8   :  { %s74_s21 = scalar_lea.vmem %s22_s13, 256  ;;  %p79_p4 = scmp.lt.s32.totalorder %s22_s13, %s22_s13 }
   0x9   :  { %p75_p3 = scmp.ne.s32.totalorder %s22_s13, %s74_s21  ;;  %p80_p5 = scmp.lt.s32.totalorder %s74_s21, %s74_s21 }
   0xb   :  { %p81_p6 = por %p80_p5, %p79_p4 }
   0xd   :  { %p82_p7 = pnand %p81_p6, %p75_p3 }
   0xf   :  { %85 = shalt.err (!%p82_p7)
}
  0x10   :  { %s113_s22 = smov 128   ;;  %s114_s23 = smov 8  }
  0x11   :  { %27 = dma.hbm_to_vmem [thread:$0]  %s174_s2, 256, %s22_s13, [#allocation5], %s113_s22, %s113_s22, %s114_s23  }
  0x12   :  { %108 = dma.done.wait [#allocation5], 256  }
  0x13   :  { %109 = vsyncadd [#allocation5], 4294967040  ;;  %v34_v0 = vstv %s172_s0  ;;  %v31_v1 = vld [vmem:[#allocation4] sm:$0xff]  ;;  %v38_v2 = vstv %s173_s1  ;;  %v32_v3 = vld [vmem:[#allocation4 + $0x8] sm:$0xff]  ;;  %s115_s30 = smov [#allocation7]  }
  0x14   :  { %s48_s4 = sshll.u32 %s115_s30, 4  ;;  %v35_v4 = vmul.f32 %v34_v0, %v31_v1  ;;  %v36_v5 = vmul.f32 %v34_v0, %v32_v3  ;;  %s49_s4 = int_to_ptr.vmem [resolvable:$true] %s48_s4 }
  0x15   :  { %s86_s2 = scalar_lea.vmem %s49_s4, 256  ;;  %p91_p9 = scmp.lt.s32.totalorder %s49_s4, %s49_s4 }
  0x16   :  { %v39_v6 = vadd.f32 %v38_v2, %v35_v4  ;;  %v40_v7 = vadd.f32 %v38_v2, %v36_v5  ;;  %p87_p8 = scmp.ne.s32.totalorder %s49_s4, %s86_s2  ;;  %p92_p10 = scmp.lt.s32.totalorder %s86_s2, %s86_s2 }
  0x18   :  { %41 = vst [vmem:[#allocation7] sm:$0xff] %v39_v6  ;;  %42 = vst [vmem:[#allocation7 + $0x8] sm:$0xff] %v40_v7  ;;  %p93_p11 = por %p92_p10, %p91_p9 }
  0x1a   :  { %p94_p12 = pnand %p93_p11, %p87_p8 }
  0x1c   :  { %97 = shalt.err (!%p94_p12)
}
  0x1d   :  { %s98_s1 = scalar_lea.hbm %s175_s3, 256 }
  0x1e   :  { %p99_p13 = scmp.ne.s32.totalorder %s175_s3, %s98_s1  ;;  %p102_p0 = scmp.lt.u32.totalorder %s98_s1, %s175_s3 }
  0x20   :  { %p104_p1 = pnand %p102_p0, %p99_p13 }
  0x22   :  { %107 = shalt.err (!%p104_p1)
}
  0x23   :  { %54 = dma.vmem_to_hbm [thread:$0]  %s49_s4, 256, %s175_s3, [#allocation6], %s113_s22, %s113_s22, %s114_s23  }
  0x24   :  { %110 = dma.done.wait [#allocation6], 256  }
  0x25   :  { %111 = vsyncadd [#allocation6], 4294967040 }
  0x26   :  { %58 = vsyncpa [#allocation5], 1 }
  0x27   :  { %59 = vsyncpa [#allocation6], 1 }

</bundles_post_ra>
